<compile_context>
chip_gen: v5e
topology: v5e:2x2
jax: 0.10.0
libtpu: 0.0.40
codegen_flags: <defaults>
</compile_context>

<pallas_src>
import jax
import jax.numpy as jnp
from jax.experimental import pallas as pl
from jax.experimental.pallas import tpu as pltpu

FEATURES = 200          # RDKit2D descriptor length (after dropping element 0)
EPS = 1e-5              # nn.BatchNorm1d default eps

_FUSED_VMEM_BUDGET = 40 * 1024 * 1024   # conservative (counts resident y 2x)
_FUSED_VMEM_LIMIT = 48 * 1024 * 1024    # safely under v7x's 64 MiB physical


def _round_up(x, m):
    return ((x + m - 1) // m) * m


# ---------------------------------------------------------------------------
# Fused path: matmul + BatchNorm stats + normalize, y resident in VMEM.
# ---------------------------------------------------------------------------
def _make_fused_kernel(nb, tb, inv_b):
    """Builds the fused kernel; nb / tb / inv_b are baked-in Python constants."""

    def kernel(x_ref, w_ref, gb_ref, o_ref, sum_ref, sq_ref):
        # x_ref: (tb, F)  w_ref: (F, Lp)  gb_ref: (2, Lp)  o_ref: (B_pad, Lp)
        y = jnp.dot(x_ref[...], w_ref[...], preferred_element_type=jnp.float32)

        if nb == 1:
            # Single-tile latency path (the actual use case): straight line,
            # no scratch traffic, one store of the normalized result.
            mean = jnp.sum(y, axis=0, keepdims=True) * inv_b
            msq = jnp.sum(y * y, axis=0, keepdims=True) * inv_b
            var = jnp.maximum(msq - mean * mean, 0.0)      # biased (training)
            rstd = jax.lax.rsqrt(var + EPS)
            scale = rstd * gb_ref[0:1, :]
            shift = gb_ref[1:2, :] - mean * scale
            o_ref[...] = y * scale + shift
            return

        i = pl.program_id(0)

        @pl.when(i == 0)
        def _():
            sum_ref[...] = jnp.zeros_like(sum_ref)
            sq_ref[...] = jnp.zeros_like(sq_ref)

        r0 = pl.multiple_of(i * tb, tb)
        o_ref[pl.ds(r0, tb), :] = y                        # stays in VMEM
        sum_ref[...] += jnp.sum(y, axis=0, keepdims=True)
        sq_ref[...] += jnp.sum(y * y, axis=0, keepdims=True)

        @pl.when(i == nb - 1)
        def _():
            mean = sum_ref[...] * inv_b
            var = jnp.maximum(sq_ref[...] * inv_b - mean * mean, 0.0)
            rstd = jax.lax.rsqrt(var + EPS)
            scale = rstd * gb_ref[0:1, :]
            shift = gb_ref[1:2, :] - mean * scale

            @pl.loop(0, nb)                                # normalize in place
            def _(t):
                s0 = pl.multiple_of(t * tb, tb)
                o_ref[pl.ds(s0, tb), :] = (
                    o_ref[pl.ds(s0, tb), :] * scale + shift)

    return kernel


# ---------------------------------------------------------------------------
# Fallback path (very large B): two-pass, batch-parallel (megacore).
# ---------------------------------------------------------------------------
def _matmul_stats_kernel(x_ref, w_ref, y_ref, stat_ref):
    # x_ref: (TB, F)  w_ref: (F, Lp)  y_ref: (TB, Lp)  stat_ref: (1, 2, Lp)
    y = jnp.dot(x_ref[...], w_ref[...], preferred_element_type=jnp.float32)
    y_ref[...] = y
    s = jnp.sum(y, axis=0, keepdims=True)          # (1, Lp)
    q = jnp.sum(y * y, axis=0, keepdims=True)      # (1, Lp)
    stat_ref[0] = jnp.concatenate([s, q], axis=0)  # row 0 = sum, row 1 = sumsq


def _normalize_kernel(y_ref, ss_ref, o_ref):
    # ss_ref: (2, Lp) packed (scale, shift)
    o_ref[...] = y_ref[...] * ss_ref[0:1, :] + ss_ref[1:2, :]


# ---------------------------------------------------------------------------
# Parameter prep (done once at model init, NOT on the per-call path).
# ---------------------------------------------------------------------------
def prepare_params(w, b, gamma, beta):
    """w: torch-layout (L, F) Linear weight; b/gamma/beta: (L,).

    The Linear bias `b` is accepted for API parity but is exactly cancelled by
    training-mode BatchNorm mean-centering, so it is not stored.
    """
    del b
    L, F = w.shape
    Lp = _round_up(L, 128)
    w_t = jnp.zeros((F, Lp), jnp.float32).at[:, :L].set(
        jnp.asarray(w, jnp.float32).T)
    gb = jnp.zeros((2, Lp), jnp.float32)
    gb = gb.at[0, :L].set(jnp.asarray(gamma, jnp.float32))
    gb = gb.at[1, :L].set(jnp.asarray(beta, jnp.float32))
    return {"w_t_pad": w_t, "gb_pad": gb, "latent_dim": L}


# ---------------------------------------------------------------------------
# Forward pass.
# ---------------------------------------------------------------------------
def rdkit_molecule_encoder(x, params, *, block_b=1024, _force_two_pass=False):
    """x: (B, 200) f32 fingerprints -> (B, latent_dim) f32."""
    w_t = params["w_t_pad"]
    gb = params["gb_pad"]
    L = params["latent_dim"]
    F, Lp = w_t.shape

    x = jnp.asarray(x, jnp.float32)
    B = x.shape[0]
    assert x.shape[1] == F, "fingerprint feature dim mismatch"

    block_b = _round_up(block_b, 8)
    if B <= block_b:
        TB = _round_up(max(B, 8), 8)
    else:
        TB = block_b
    B_pad = _round_up(B, TB)
    nb = B_pad // TB

    # Batch-only padding (no K padding); skipped entirely when not needed.
    x_p = x if B_pad == B else jnp.zeros((B_pad, F), jnp.float32).at[:B].set(x)
    inv_b = 1.0 / B

    # Conservative VMEM estimate for the fused (resident-y) path: resident
    # output counted twice + double-buffered x tiles + weights.
    fused_vmem = 4 * (2 * B_pad * Lp + 2 * TB * F + 2 * F * Lp + 8 * Lp)

    if fused_vmem <= _FUSED_VMEM_BUDGET and not _force_two_pass:
        out = pl.pallas_call(
            _make_fused_kernel(nb, TB, inv_b),
            out_shape=jax.ShapeDtypeStruct((B_pad, Lp), jnp.float32),
            grid=(nb,),
            in_specs=[
                pl.BlockSpec((TB, F), lambda i: (i, 0)),
                pl.BlockSpec((F, Lp), lambda i: (0, 0)),
                pl.BlockSpec((2, Lp), lambda i: (0, 0)),
            ],
            out_specs=pl.BlockSpec((B_pad, Lp), lambda i: (0, 0)),
            scratch_shapes=[pltpu.VMEM((1, Lp), jnp.float32),
                            pltpu.VMEM((1, Lp), jnp.float32)],
            compiler_params=pltpu.CompilerParams(
                dimension_semantics=("arbitrary",),
                vmem_limit_bytes=_FUSED_VMEM_LIMIT),
            cost_estimate=pl.CostEstimate(
                flops=2 * B_pad * F * Lp + 8 * B_pad * Lp,
                transcendentals=Lp,
                bytes_accessed=4 * (B_pad * F + F * Lp + 2 * Lp + B_pad * Lp)),
        )(x_p, w_t, gb)
        return out[:B, :L]

    # ---- Pass 1: y = x @ W plus packed per-tile stats -----------------------
    y, stats = pl.pallas_call(
        _matmul_stats_kernel,
        out_shape=(jax.ShapeDtypeStruct((B_pad, Lp), jnp.float32),
                   jax.ShapeDtypeStruct((nb, 2, Lp), jnp.float32)),
        grid=(nb,),
        in_specs=[
            pl.BlockSpec((TB, F), lambda i: (i, 0)),
            pl.BlockSpec((F, Lp), lambda i: (0, 0)),
        ],
        out_specs=(pl.BlockSpec((TB, Lp), lambda i: (i, 0)),
                   pl.BlockSpec((1, 2, Lp), lambda i: (i, 0, 0))),
        compiler_params=pltpu.CompilerParams(
            dimension_semantics=("parallel",)),
        cost_estimate=pl.CostEstimate(
            flops=2 * B_pad * F * Lp + 3 * B_pad * Lp,
            transcendentals=0,
            bytes_accessed=4 * (B_pad * F + F * Lp + B_pad * Lp
                                + nb * 2 * Lp)),
    )(x_p, w_t)

    # ---- Tiny stat combine (padded rows contribute exact zeros) -------------
    tot = jnp.sum(stats, axis=0)                              # (2, Lp)
    mean = tot[0] * inv_b
    var = jnp.maximum(tot[1] * inv_b - mean * mean, 0.0)      # biased (training)
    rstd = jax.lax.rsqrt(var + EPS)
    scale = rstd * gb[0]
    shift = gb[1] - mean * scale
    ss = jnp.stack([scale, shift], axis=0)                    # (2, Lp)

    # ---- Pass 2: fused normalize epilogue ------------------------------------
    out = pl.pallas_call(
        _normalize_kernel,
        out_shape=jax.ShapeDtypeStruct((B_pad, Lp), jnp.float32),
        grid=(nb,),
        in_specs=[
            pl.BlockSpec((TB, Lp), lambda i: (i, 0)),
            pl.BlockSpec((2, Lp), lambda i: (0, 0)),
        ],
        out_specs=pl.BlockSpec((TB, Lp), lambda i: (i, 0)),
        compiler_params=pltpu.CompilerParams(
            dimension_semantics=("parallel",)),
        cost_estimate=pl.CostEstimate(
            flops=2 * B_pad * Lp,
            transcendentals=0,
            bytes_accessed=4 * (2 * B_pad * Lp + 2 * Lp)),
    )(y, ss)
    return out[:B, :L]


# ---------------------------------------------------------------------------
# Pure-JAX reference (Linear + training-mode BatchNorm1d).
# ---------------------------------------------------------------------------
def _reference(x, w, b, gamma, beta):
    y = x @ w.T + b[None, :]
    mean = y.mean(axis=0, keepdims=True)
    var = ((y - mean) ** 2).mean(axis=0, keepdims=True)
    return (y - mean) / jnp.sqrt(var + EPS) * gamma[None, :] + beta[None, :]


if __name__ == "__main__":
    key = jax.random.PRNGKey(0)
    LATENT_DIM = 32
    k_x, k_w, k_x2 = jax.random.split(key, 3)

    # Linear params: xavier_uniform weight (torch layout (L, F)), bias 0.01
    # (init_weights), BatchNorm1d default affine params.
    limit = (6.0 / (FEATURES + LATENT_DIM)) ** 0.5
    w = jax.random.uniform(k_w, (LATENT_DIM, FEATURES), dtype=jnp.float32,
                           minval=-limit, maxval=limit)
    b = jnp.full((LATENT_DIM,), 0.01, dtype=jnp.float32)
    gamma = jnp.ones((LATENT_DIM,), dtype=jnp.float32)
    beta = jnp.zeros((LATENT_DIM,), dtype=jnp.float32)

    params = prepare_params(w, b, gamma, beta)        # padded once, at init

    # 1) Use-case shape: small batch of SMILES fingerprints (fused, single tile).
    B = 8
    x = jax.random.normal(k_x, (B, FEATURES), dtype=jnp.float32)
    out = jax.block_until_ready(rdkit_molecule_encoder(x, params))
    ref = _reference(x, w, b, gamma, beta)
    assert out.shape == (B, LATENT_DIM)
    assert jnp.allclose(out, ref, atol=1e-4, rtol=1e-4), "fused(single) mismatch"

    # 2) Multi-tile fused path (resident y, ragged last tile) and
    # 3) two-pass fallback path -- exercised at small shapes for validation.
    B2 = 40
    x2 = jax.random.normal(k_x2, (B2, FEATURES), dtype=jnp.float32)
    ref2 = _reference(x2, w, b, gamma, beta)
    out2 = jax.block_until_ready(rdkit_molecule_encoder(x2, params, block_b=16))
    assert jnp.allclose(out2, ref2, atol=1e-4, rtol=1e-4), "fused(tiled) mismatch"
    out3 = jax.block_until_ready(
        rdkit_molecule_encoder(x2, params, block_b=16, _force_two_pass=True))
    assert jnp.allclose(out3, ref2, atol=1e-4, rtol=1e-4), "two-pass mismatch"

    print("KERNEL_OK")
</pallas_src>

<mosaic_0001>
module attributes {stable_mosaic.version = 11 : i64} {
  func.func @kernel(%arg0: i32, %arg1: memref<8x200xf32, #tpu.memory_space<vmem>>, %arg2: memref<200x128xf32, #tpu.memory_space<vmem>>, %arg3: memref<2x128xf32, #tpu.memory_space<vmem>>, %arg4: memref<8x128xf32, #tpu.memory_space<vmem>>, %arg5: memref<1x128xf32, #tpu.memory_space<vmem>>, %arg6: memref<1x128xf32, #tpu.memory_space<vmem>>) attributes {dimension_semantics = [#tpu.dimension_semantics<arbitrary>], iteration_bounds = array<i64: 1>, scalar_prefetch = 0 : i64, scratch_operands = 2 : i64, tpu.core_type = #tpu.core_type<tc>, window_params = [{transform_indices = @transform_0, window_bounds = array<i64: 8, 200>}, {pipeline_mode = #tpu.pipeline_mode<synchronous>, transform_indices = @transform_1, window_bounds = array<i64: 200, 128>}, {pipeline_mode = #tpu.pipeline_mode<synchronous>, transform_indices = @transform_2, window_bounds = array<i64: 2, 128>}, {pipeline_mode = #tpu.pipeline_mode<synchronous>, transform_indices = @transform_3, window_bounds = array<i64: 8, 128>}]} {
    %c0 = arith.constant 0 : index
    %c0_0 = arith.constant 0 : index
    %0 = vector.load %arg1[%c0, %c0_0] : memref<8x200xf32, #tpu.memory_space<vmem>>, vector<8x200xf32>
    %c0_1 = arith.constant 0 : index
    %c0_2 = arith.constant 0 : index
    %1 = vector.load %arg2[%c0_1, %c0_2] : memref<200x128xf32, #tpu.memory_space<vmem>>, vector<200x128xf32>
    %cst = arith.constant dense<0.000000e+00> : vector<8x128xf32>
    %2 = tpu.matmul %0, %1, %cst {dimension_numbers = #tpu.dot_dimension_numbers<[1], [0], [0], [1], [0, 0, 1, 1], [], []>} : vector<8x200xf32>, vector<200x128xf32>, vector<8x128xf32> -> vector<8x128xf32>
    %cst_3 = arith.constant dense<0.000000e+00> : vector<128xf32>
    %3 = vector.multi_reduction <add>, %2, %cst_3 [0] : vector<8x128xf32> to vector<128xf32>
    %4 = vector.shape_cast %3 : vector<128xf32> to vector<1x128xf32>
    %cst_4 = arith.constant 1.250000e-01 : f32
    %5 = vector.broadcast %cst_4 : f32 to vector<1x128xf32>
    %6 = arith.mulf %4, %5 : vector<1x128xf32>
    %7 = arith.mulf %2, %2 : vector<8x128xf32>
    %cst_5 = arith.constant dense<0.000000e+00> : vector<128xf32>
    %8 = vector.multi_reduction <add>, %7, %cst_5 [0] : vector<8x128xf32> to vector<128xf32>
    %9 = vector.shape_cast %8 : vector<128xf32> to vector<1x128xf32>
    %cst_6 = arith.constant 1.250000e-01 : f32
    %10 = vector.broadcast %cst_6 : f32 to vector<1x128xf32>
    %11 = arith.mulf %9, %10 : vector<1x128xf32>
    %12 = arith.mulf %6, %6 : vector<1x128xf32>
    %13 = arith.subf %11, %12 : vector<1x128xf32>
    %cst_7 = arith.constant 0.000000e+00 : f32
    %14 = vector.broadcast %cst_7 : f32 to vector<1x128xf32>
    %15 = arith.maximumf %13, %14 : vector<1x128xf32>
    %cst_8 = arith.constant 9.99999974E-6 : f32
    %16 = vector.broadcast %cst_8 : f32 to vector<1x128xf32>
    %17 = arith.addf %15, %16 : vector<1x128xf32>
    %18 = math.rsqrt %17 : vector<1x128xf32>
    %c0_9 = arith.constant 0 : index
    %c0_10 = arith.constant 0 : index
    %19 = vector.load %arg3[%c0_9, %c0_10] : memref<2x128xf32, #tpu.memory_space<vmem>>, vector<1x128xf32>
    %20 = arith.mulf %18, %19 : vector<1x128xf32>
    %c1 = arith.constant 1 : index
    %c0_11 = arith.constant 0 : index
    %21 = vector.load %arg3[%c1, %c0_11] : memref<2x128xf32, #tpu.memory_space<vmem>>, vector<1x128xf32>
    %22 = arith.mulf %6, %20 : vector<1x128xf32>
    %23 = arith.subf %21, %22 : vector<1x128xf32>
    %24 = vector.broadcast %20 : vector<1x128xf32> to vector<8x128xf32>
    %25 = arith.mulf %2, %24 : vector<8x128xf32>
    %26 = vector.broadcast %23 : vector<1x128xf32> to vector<8x128xf32>
    %27 = arith.addf %25, %26 : vector<8x128xf32>
    %c0_12 = arith.constant 0 : index
    %c0_13 = arith.constant 0 : index
    %28 = vector.load %arg4[%c0_12, %c0_13] : memref<8x128xf32, #tpu.memory_space<vmem>>, vector<8x128xf32>
    tpu.vector_store %arg4[%c0_12, %c0_13], %27 {strides = array<i32>} : memref<8x128xf32, #tpu.memory_space<vmem>>, vector<8x128xf32>,
    return
  }
  func.func @transform_0(%arg0: i32) -> (i32, i32) {
    %c0_i32 = arith.constant 0 : i32
    %c0_i32_0 = arith.constant 0 : i32
    return %arg0, %c0_i32 : i32, i32
  }
  func.func @transform_1(%arg0: i32) -> (i32, i32) {
    %c0_i32 = arith.constant 0 : i32
    %c0_i32_0 = arith.constant 0 : i32
    %c0_i32_1 = arith.constant 0 : i32
    return %c0_i32, %c0_i32_0 : i32, i32
  }
  func.func @transform_2(%arg0: i32) -> (i32, i32) {
    %c0_i32 = arith.constant 0 : i32
    %c0_i32_0 = arith.constant 0 : i32
    %c0_i32_1 = arith.constant 0 : i32
    return %c0_i32, %c0_i32_0 : i32, i32
  }
  func.func @transform_3(%arg0: i32) -> (i32, i32) {
    %c0_i32 = arith.constant 0 : i32
    %c0_i32_0 = arith.constant 0 : i32
    %c0_i32_1 = arith.constant 0 : i32
    return %c0_i32, %c0_i32_0 : i32, i32
  }
}

</mosaic_0001>

<bundles_post_ra>
// kernel: tpu_custom_call.1
= control target key start
LH: loop header
LB: loop body
LE: loop exit
PB: predicated region body
PF: predicated region fallthrough
CT: control target
= control target key end

     0   :  { %8 = vsyncpa [#allocation5], 0  ;;  %s335_s0 = inlined_call_operand.hbm [shape: f32[8,200], index: 0, kind: input, shape index: {}]   ;;  %s336_s1 = inlined_call_operand.hbm [shape: f32[200,128], index: 1, kind: input, shape index: {}]   ;;  %s337_s2 = inlined_call_operand.hbm [shape: f32[2,128], index: 2, kind: input, shape index: {}]   ;;  %s338_s3 = inlined_call_operand.hbm [shape: f32[8,128], index: 3, kind: output, shape index: {}]  }
   0x1   :  { %9 = vsyncpa [#allocation8], 0  ;;  %s26_s14 = sshll.u32 %s336_s1, 4  ;;  %s27_s14 = int_to_ptr.hbm [resolvable:$true] %s26_s14 }
   0x2   :  { %10 = vsyncpa [#allocation6], 0  ;;  %s297_s15 = smov [#allocation7]   ;;  %s16_s19 = sshll.u32 %s335_s0, 4  ;;  %s17_s19 = int_to_ptr.hbm [resolvable:$true] %s16_s19 }
   0x3   :  { %s28_s16 = sshll.u32 %s297_s15, 4  ;;  %s298_s20 = smov 128   ;;  %s29_s16 = int_to_ptr.vmem [resolvable:$true] %s28_s16 }
   0x4   :  { %s299_s21 = smov 8   ;;  %s300_s22 = smov [#allocation4]  }
   0x5   :  { %34 = dma.hbm_to_vmem [thread:$0]  %s27_s14, 3200, %s29_s16, [#allocation8], %s298_s20, %s298_s20, %s299_s21  }
   0x6   :  { %s18_s23 = sshll.u32 %s300_s22, 4  ;;  %s40_s26 = sshll.u32 %s337_s2, 4  ;;  %s19_s23 = int_to_ptr.vmem [resolvable:$true] %s18_s23  ;;  %s41_s26 = int_to_ptr.hbm [resolvable:$true] %s40_s26 }
   0x7   :  { %21 = dma.hbm_to_vmem [thread:$0]  %s17_s19, 256, %s19_s23, [#allocation5]  }
   0x8   :  { %s301_s1 = smov [#allocation9]  }
   0x9   :  { %s42_s27 = sshll.u32 %s301_s1, 4  ;;  %s43_s27 = int_to_ptr.vmem [resolvable:$true] %s42_s27 }
   0xa   :  { %45 = dma.hbm_to_vmem [thread:$0]  %s41_s26, 32, %s43_s27, [#allocation8]  }
   0xb   :  { %291 = dma.done.wait [#allocation5], 256  }
   0xc   :  { %292 = vsyncadd [#allocation5], 4294967040 }
   0xd   :  { %293 = dma.done.wait [#allocation8], 3232  }
   0xe   :  { %294 = vsyncadd [#allocation8], 4294964064  ;;  %v75_v0 = vld [vmem:[#allocation7 + $0x78] sm:$0xff]  ;;  %v74_v1 = vld [vmem:[#allocation7 + $0x70] sm:$0xff]  ;;  %vm85_vm0 = vcmask 588800   ;;  %s302_s0 = smov [#allocation10]  }
   0xf   :  { %89 = vmatpush.msra.mxu0 %v75_v0  ;;  %v73_v2 = vld [vmem:[#allocation7 + $0x68] sm:$0xff]  ;;  %v84_v3 = vld [vmem:[#allocation7 + $0xc0] sm:$0xff]  ;;  %v83_v4 = vld [vmem:[#allocation7 + $0xb8] sm:$0xff]  ;;  %s173_s2 = sshll.u32 %s302_s0, 4  ;;  %s175_s30 = sshll.u32 %s338_s3, 4  ;;  %s174_s2 = int_to_ptr.vmem [resolvable:$true] %s173_s2  ;;  %s176_s30 = int_to_ptr.hbm [resolvable:$true] %s175_s30 }
  0x10   :  { %116 = vmatpush.msra.mxu1 %v84_v3  ;;  %v72_v5 = vld [vmem:[#allocation7 + $0x60] sm:$0xff]  ;;  %v82_v6 = vld [vmem:[#allocation7 + $0xb0] sm:$0xff]  ;;  %v71_v7 = vld [vmem:[#allocation7 + $0x58] sm:$0xff] }
  0x11   :  { %90 = vmatpush.msra.mxu0 %v74_v1  ;;  %v81_v8 = vld [vmem:[#allocation7 + $0xa8] sm:$0xff]  ;;  %v70_v9 = vld [vmem:[#allocation7 + $0x50] sm:$0xff]  ;;  %v80_v10 = vld [vmem:[#allocation7 + $0xa0] sm:$0xff] }
  0x12   :  { %117 = vmatpush.msra.mxu1 %v83_v4  ;;  %v69_v11 = vld [vmem:[#allocation7 + $0x48] sm:$0xff]  ;;  %v79_v12 = vld [vmem:[#allocation7 + $0x98] sm:$0xff]  ;;  %v68_v13 = vld [vmem:[#allocation7 + $0x40] sm:$0xff] }
  0x13   :  { %91 = vmatpush.msra.mxu0 %v73_v2  ;;  %v78_v14 = vld [vmem:[#allocation7 + $0x90] sm:$0xff]  ;;  %v67_v15 = vld [vmem:[#allocation7 + $0x38] sm:$0xff]  ;;  %v77_v16 = vld [vmem:[#allocation7 + $0x88] sm:$0xff] }
  0x14   :  { %118 = vmatpush.msra.mxu1 %v82_v6  ;;  %v66_v17 = vld [vmem:[#allocation7 + $0x30] sm:$0xff]  ;;  %v76_v18 = vld [vmem:[#allocation7 + $0x80] sm:$0xff]  ;;  %v59_v19 = vld [vmem:[#allocation4 + $0x8] sm:$0xff] }
  0x15   :  { %92 = vmatpush.msra.mxu0 %v72_v5  ;;  %v65_v20 = vld [vmem:[#allocation7 + $0x28] sm:$0xff]  ;;  %v64_v21 = vld [vmem:[#allocation7 + $0x20] sm:$0xff]  ;;  %v63_v22 = vld [vmem:[#allocation7 + $0x18] sm:$0xff] }
  0x16   :  { %119 = vmatpush.msra.mxu1 %v81_v8  ;;  %v62_v23 = vld [vmem:[#allocation7 + $0x10] sm:$0xff]  ;;  %v61_v24 = vld [vmem:[#allocation7 + $0x8] sm:$0xff]  ;;  %v60_v25 = vld [vmem:[#allocation7] sm:$0xff] }
  0x17   :  { %93 = vmatpush.msra.mxu0 %v71_v7  ;;  %v58_v26 = vld [vmem:[#allocation4] sm:$0xff]  ;;  %v158_v55 = vld [vmem:[#allocation9] sm:$0x1]  ;;  %v160_v58 = vld [vmem:[#allocation9 + $0x1] sm:$0x1] }
  0x18   :  { %120 = vmatpush.msra.mxu1 %v80_v10 }
  0x19   :  { %94 = vmatpush.msra.mxu0 %v70_v9 }
  0x1a   :  { %121 = vmatpush.msra.mxu1 %v79_v12 }
  0x1b   :  { %95 = vmatpush.msra.mxu0 %v69_v11 }
  0x1c   :  { %122 = vmatpush.msra.mxu1 %v78_v14 }
  0x1d   :  { %96 = vmatpush.msra.mxu0 %v68_v13 }
  0x1e   :  { %123 = vmatpush.msra.mxu1 %v77_v16 }
  0x1f   :  { %97 = vmatpush.msra.mxu0 %v67_v15 }
  0x20   :  { %124 = vmatpush.msra.mxu1 %v76_v18 }
  0x21   :  { %98 = vmatpush.msra.mxu0 %v66_v17  ;;  %186 = vmatmul.msk.f32.vlgmr.msra.gmra.mxu1 %vm85_vm0, %v59_v19 }
  0x23   :  { %99 = vmatpush.msra.mxu0 %v65_v20 }
  0x25   :  { %100 = vmatpush.msra.mxu0 %v64_v21 }
  0x27   :  { %101 = vmatpush.msra.mxu0 %v63_v22 }
  0x29   :  { %102 = vmatpush.msra.mxu0 %v62_v23 }
  0x2b   :  { %103 = vmatpush.msra.mxu0 %v61_v24 }
  0x2d   :  { %104 = vmatpush.msra.mxu0 %v60_v25 }
  0x2e   :  { %105 = vmatmul.f32.vlgmr.msra.gmra.mxu0 %v58_v26 }
  0x9e   :  { %v126_v27 = vpop.f32.mrf.mxu1 }
  0xab   :  { %v106_v28 = vpop.f32.mrf.mxu0 }
  0xac   :  { %v127_v29 = vadd.f32 %v126_v27, %v106_v28 }
  0xae   :  { %v129_v30 = vrot.slane %v127_v29, 4  ;;  %v136_v31 = vmul.f32 %v127_v29, %v127_v29 }
  0xb0   :  { %v130_v32 = vadd.f32 %v129_v30, %v127_v29  ;;  %v137_v33 = vrot.slane %v136_v31, 4 }
  0xb2   :  { %v131_v34 = vrot.slane %v130_v32, 2  ;;  %v138_v35 = vadd.f32 %v137_v33, %v136_v31 }
  0xb4   :  { %v132_v36 = vadd.f32 %v131_v34, %v130_v32  ;;  %v139_v37 = vrot.slane %v138_v35, 2 }
  0xb6   :  { %v133_v38 = vrot.slane %v132_v36, 1  ;;  %v140_v39 = vadd.f32 %v139_v37, %v138_v35 }
  0xb8   :  { %v141_v40 = vrot.slane %v140_v39, 1  ;;  %v134_v41 = vadd.f32 %v133_v38, %v132_v36 }
  0xba   :  { %v142_v42 = vadd.f32 %v141_v40, %v140_v39  ;;  %v135_v43 = vmul.f32 0.125, %v134_v41 }
  0xbc   :  { %v143_v44 = vmul.f32 0.125, %v142_v42  ;;  %v144_v45 = vmul.f32 %v135_v43, %v135_v43 }
  0xbe   :  { %v145_v46 = vsub.f32 %v143_v44, %v144_v45 }
  0xc0   :  { %v146_v47 = vmax.f32 %v145_v46, 0.0 }
  0xc2   :  { %v147_v48 = vadd.f32 1e-05, %v146_v47 }
  0xc4   :  { %193 = vrsqrt.f32 %v147_v48  ;;  %vm154_vm2 = vweird.f32 %v147_v48 }
  0xca   :  { %v194_v49 = vpop.eup %193 }
  0xcb   :  { %v149_v50 = vmul.f32 %v194_v49, %v147_v48  ;;  %vm155_vm1 = vweird.f32 %v194_v49 }
  0xcc   :  { %vm156_vm3 = vmor %vm154_vm2, %vm155_vm1 }
  0xcd   :  { %v150_v51 = vmul.f32 %v194_v49, %v149_v50 }
  0xcf   :  { %v151_v52 = vmul.f32 0.5, %v150_v51 }
  0xd1   :  { %v152_v53 = vsub.f32 1.5, %v151_v52 }
  0xd3   :  { %v153_v54 = vmul.f32 %v194_v49, %v152_v53 }
  0xd5   :  { %v157_v56 = vsel %vm156_vm3, %v194_v49, %v153_v54 }
  0xd6   :  { %v159_v57 = vmul.f32 %v158_v55, %v157_v56 }
  0xd8   :  { %v161_v59 = vmul.f32 %v159_v57, %v135_v43  ;;  %v163_v60 = vperm.slane %v159_v57, 0 }
  0xda   :  { %v162_v61 = vsub.f32 %v160_v58, %v161_v59  ;;  %v164_v62 = vmul.f32 %v163_v60, %v127_v29 }
  0xdc   :  { %v165_v63 = vperm.slane %v162_v61, 0 }
  0xde   :  { %v166_v0 = vadd.f32 %v165_v63, %v164_v62 }
  0xe0   :  { %167 = vst [vmem:[#allocation10] sm:$0xff] %v166_v0 }
  0xe1   :  { %178 = dma.vmem_to_hbm [thread:$0]  %s174_s2, 128, %s176_s30, [#allocation6]  }
  0xe2   :  { %295 = dma.done.wait [#allocation6], 128  }
  0xe3   :  { %296 = vsyncadd [#allocation6], 4294967168 }
  0xe4   :  { %183 = vsyncpa [#allocation5], 1 }
  0xe5   :  { %184 = vsyncpa [#allocation8], 1 }
  0xe6   :  { %185 = vsyncpa [#allocation6], 1 }

</bundles_post_ra>
